<compile_context>
chip_gen: v5e
topology: v5e:2x2
jax: 0.10.0
libtpu: 0.0.40
codegen_flags: <defaults>
</compile_context>

<pallas_src>
import functools

import jax
import jax.numpy as jnp
from jax.experimental import pallas as pl
from jax.experimental.pallas import tpu as pltpu

# ---- static module config ---------------------------------------------------
SCALE = 0.1
DUAL_NORM = False
PRE_NORM = False
TEMP = 1.0
IDENTITY = False
LN_EPS = 1e-6
L2_EPS = 1e-12  # torch.nn.functional.normalize default eps (clamp on the norm)


def _vmem_capacity_bytes():
    """Physical VMEM per TensorCore (generation-aware), with a safe fallback."""
    try:
        info = pltpu.get_tpu_info()
        cap = getattr(info, "vmem_capacity_bytes", None)
        if cap:
            return int(cap)
    except Exception:
        pass
    return 64 * 1024 * 1024  # conservative (v7x per-TC VMEM)


def _pick_tiling(lp, d, in_itemsize, mxu_itemsize, cast_values, budget):
    """Pick (tq, kv_buffer_count): biggest query tile that fits the VMEM budget,
    preferring double-buffered KV, then single-buffered KV, then smallest tile."""

    def vmem_est(tq, kv_bufs):
        b = kv_bufs * lp * d * in_itemsize          # pipelined resident KV block
        b += 2 * tq * d * in_itemsize               # double-buffered output tile
        b += lp * d * mxu_itemsize                  # xn scratch
        if cast_values:
            b += lp * d * mxu_itemsize              # value-cast scratch
        b += 2 * tq * lp * 4                        # sim / exp(sim) f32
        b += 8 * tq * d * 4                         # base / x_neg / LN temps (f32)
        return b

    cands = []
    for c in (lp, 2048, 1024, 512, 256, 128):
        if c <= lp and lp % c == 0 and (c % 8 == 0 or c == lp) and c not in cands:
            cands.append(c)
    if not cands:
        cands = [lp]
    for kv_bufs in (2, 1):
        for tq in cands:
            if vmem_est(tq, kv_bufs) <= budget:
                return tq, kv_bufs
    return cands[-1], 1


def _make_kernel(*, tq, lp, l_valid, mxu_dtype, cast_values):
    def kernel(x_ref, gamma_ref, beta_ref, o_ref, xn_ref, *v_scratch):
        # x_ref : (1, Lp, D) resident keys/values (and queries) for this batch.
        # xn_ref: (Lp, D) mxu_dtype scratch, carried across the q grid axis.
        q_start = pl.multiple_of(pl.program_id(1) * tq, tq)

        # --- once per batch element: L2-normalize the full KV block ----------
        @pl.when(pl.program_id(1) == 0)
        def _():
            xk = x_ref[0].astype(jnp.float32)                        # (Lp, D)
            ssq = jnp.sum(xk * xk, axis=-1, keepdims=True)
            inv = jax.lax.rsqrt(jnp.maximum(ssq, L2_EPS * L2_EPS))   # EUP
            xn_ref[...] = (xk * inv).astype(mxu_dtype)
            if cast_values:
                v_scratch[0][...] = x_ref[0].astype(mxu_dtype)

        # --- per query tile ---------------------------------------------------
        xn_q = xn_ref[pl.ds(q_start, tq), :]                         # (tq, D) mxu
        xn_k = xn_ref[...]                                           # (Lp, D) mxu
        if PRE_NORM:
            base = xn_q.astype(jnp.float32)
            v_mm = xn_k
        else:
            base = x_ref[0, pl.ds(q_start, tq), :].astype(jnp.float32)
            v_mm = v_scratch[0][...] if cast_values else x_ref[0]

        # sim = xn_q @ xn_k^T : contract last dims of both (no transpose).
        sim = jax.lax.dot_general(
            xn_q, xn_k, (((1,), (1,)), ((), ())),
            preferred_element_type=jnp.float32)                      # (tq, Lp)

        if TEMP == 1.0:
            # Cosine similarity in [-1, 1]: exp cannot overflow, skip the
            # (tq, Lp) max-reduce + subtract.
            e = jnp.exp(sim)
        else:
            sim = sim * jnp.float32(1.0 / TEMP)
            e = jnp.exp(sim - jnp.max(sim, axis=-1, keepdims=True))

        if l_valid < lp:
            # Mask padded key columns (padded x rows are zero, so only the
            # softmax denominator needs the mask).
            col = jax.lax.broadcasted_iota(jnp.int32, e.shape, 1)
            e = jnp.where(col < l_valid, e, jnp.float32(0.0))

        rowsum = jnp.sum(e, axis=-1, keepdims=True)                  # (tq, 1)

        # Deferred softmax normalization: normalize the (tq, D) result instead
        # of the (tq, Lp) probabilities, folding SCALE into the same multiply.
        x_neg = jnp.dot(e.astype(mxu_dtype), v_mm,
                        preferred_element_type=jnp.float32)          # (tq, D)
        w = jnp.float32(SCALE) * pl.reciprocal(rowsum, approx=True)  # (tq, 1)
        if IDENTITY:
            y = jnp.float32(1.0 + SCALE) * base - x_neg * w
        else:
            y = base - x_neg * w

        # --- LayerNorm over D (eps=1e-6) --------------------------------------
        mean = jnp.mean(y, axis=-1, keepdims=True)
        yc = y - mean
        var = jnp.mean(yc * yc, axis=-1, keepdims=True)
        y_hat = yc * jax.lax.rsqrt(var + LN_EPS)
        out = (y_hat * gamma_ref[...].astype(jnp.float32)
               + beta_ref[...].astype(jnp.float32))
        o_ref[0] = out.astype(o_ref.dtype)

    return kernel


@functools.partial(jax.jit, static_argnames=("tq", "mxu_dtype"))
def contranorm(x, gamma, beta, *, tq=None, mxu_dtype=None):
    assert not DUAL_NORM, "dual_norm=True not supported by the tiled kernel"
    B, L, D = x.shape
    in_dtype = jnp.dtype(x.dtype)
    if mxu_dtype is None:
        mxu_dtype = jnp.bfloat16          # fast MXU path (biggest win on v5e)
    mxu_dtype = jnp.dtype(mxu_dtype)
    cast_values = (in_dtype != mxu_dtype) and not PRE_NORM

    # Pad L to a multiple of 128 so query tiling stays (8,128)-aligned
    # (e.g. ViT L=197 -> 256); padded keys are masked in-kernel, padded query
    # rows are sliced off the output.
    if L > 128 and L % 128 != 0:
        Lp = ((L + 127) // 128) * 128
    else:
        Lp = L
    x_p = x if Lp == L else jnp.pad(x, ((0, 0), (0, Lp - L), (0, 0)))

    cap = _vmem_capacity_bytes()
    vmem_limit = int(cap * 0.5)           # ~64 MiB on v5e/v6e, ~32 MiB on v7x
    budget = int(cap * 0.40)              # headroom for compiler temps

    kv_bufs = 2
    if tq is None:
        tq, kv_bufs = _pick_tiling(Lp, D, in_dtype.itemsize,
                                   mxu_dtype.itemsize, cast_values, budget)
    assert Lp % tq == 0, f"query tile {tq} must divide padded L={Lp}"

    gamma2 = gamma.reshape(1, D)
    beta2 = beta.reshape(1, D)

    # Single-buffer the resident KV block only when VMEM-constrained (v7x):
    # it re-DMAs only at batch boundaries, so the exposed copy is cheap.
    kv_spec_kwargs = {} if kv_bufs != 1 else dict(pipeline_mode=pl.Buffered(1))

    scratch = [pltpu.VMEM((Lp, D), mxu_dtype)]          # xn (normalized keys)
    if cast_values:
        scratch.append(pltpu.VMEM((Lp, D), mxu_dtype))  # mxu-dtype values

    kernel = _make_kernel(tq=tq, lp=Lp, l_valid=L,
                          mxu_dtype=mxu_dtype, cast_values=cast_values)

    out = pl.pallas_call(
        kernel,
        out_shape=jax.ShapeDtypeStruct((B, Lp, D), in_dtype),
        grid_spec=pltpu.PrefetchScalarGridSpec(
            num_scalar_prefetch=0,
            grid=(B, Lp // tq),
            in_specs=[
                # x: resident across the q axis; queries sliced in-kernel.
                pl.BlockSpec((1, Lp, D), lambda b, q: (b, 0, 0),
                             **kv_spec_kwargs),
                pl.BlockSpec((1, D), lambda b, q: (0, 0)),
                pl.BlockSpec((1, D), lambda b, q: (0, 0)),
            ],
            out_specs=pl.BlockSpec((1, tq, D), lambda b, q: (b, q, 0)),
            scratch_shapes=scratch,
        ),
        compiler_params=pltpu.CompilerParams(
            # q axis is "arbitrary": the xn scratch is carried across it
            # (initialized at q == 0), so it must stay on one core (v7x).
            dimension_semantics=("parallel", "arbitrary"),
            vmem_limit_bytes=vmem_limit,
        ),
    )(x_p, gamma2, beta2)
    return out if Lp == L else out[:, :L, :]


# ---- pure-JAX reference for correctness check --------------------------------
def contranorm_ref(x, gamma, beta):
    x = x.astype(jnp.float32)
    norm = jnp.sqrt(jnp.sum(x * x, axis=-1, keepdims=True))
    xn = x / jnp.maximum(norm, L2_EPS)
    if PRE_NORM:
        x = xn
    sim = jnp.einsum("bld,bmd->blm", xn, xn) / TEMP
    if DUAL_NORM:
        sim = jax.nn.softmax(sim, axis=2) + jax.nn.softmax(sim, axis=1)
    else:
        sim = jax.nn.softmax(sim, axis=2)
    x_neg = jnp.einsum("blm,bmd->bld", sim, x)
    if IDENTITY:
        y = (1.0 + SCALE) * x - SCALE * x_neg
    else:
        y = x - SCALE * x_neg
    mean = jnp.mean(y, axis=-1, keepdims=True)
    var = jnp.mean((y - mean) ** 2, axis=-1, keepdims=True)
    y_hat = (y - mean) * jax.lax.rsqrt(var + LN_EPS)
    return y_hat * gamma + beta


if __name__ == "__main__":
    key = jax.random.PRNGKey(0)

    # 1) small f32 case (single query tile per batch element)
    B, L, D = 2, 8, 32
    x = jax.random.normal(key, (B, L, D), dtype=jnp.float32)
    gamma = jnp.ones((D,), dtype=jnp.float32)   # nn.LayerNorm weight init
    beta = jnp.zeros((D,), dtype=jnp.float32)   # nn.LayerNorm bias init
    ref = contranorm_ref(x, gamma, beta)
    # strict-parity knob (f32 MXU operands)
    out_strict = jax.block_until_ready(contranorm(x, gamma, beta,
                                                  mxu_dtype=jnp.float32))
    assert out_strict.shape == (B, L, D)
    assert jnp.allclose(out_strict, ref, atol=2e-3, rtol=2e-3), "f32 strict mismatch"
    # default fast path (bf16 MXU operands, f32 accumulation)
    out_fast = jax.block_until_ready(contranorm(x, gamma, beta))
    assert jnp.allclose(out_fast, ref, atol=3e-2, rtol=3e-2), "f32 fast mismatch"

    # 2) lane-aligned f32 case exercising the query-tiled grid (2 q-tiles each)
    B2, L2, D2 = 2, 256, 128
    k1, k2 = jax.random.split(key)
    x2 = jax.random.normal(k1, (B2, L2, D2), dtype=jnp.float32)
    g2 = 1.0 + 0.1 * jax.random.normal(k2, (D2,), dtype=jnp.float32)
    b2 = 0.1 * jax.random.normal(k2, (D2,), dtype=jnp.float32)
    ref2 = contranorm_ref(x2, g2, b2)
    out2 = jax.block_until_ready(contranorm(x2, g2, b2, tq=128,
                                            mxu_dtype=jnp.float32))
    assert jnp.allclose(out2, ref2, atol=2e-3, rtol=2e-3), "f32 tiled mismatch"
    out2f = jax.block_until_ready(contranorm(x2, g2, b2, tq=128))
    assert jnp.allclose(out2f, ref2, atol=5e-2, rtol=5e-2), "f32/bf16-MXU mismatch"

    # 3) bf16 input: MXU operands fed in bf16 with f32 accumulation
    x3 = x2.astype(jnp.bfloat16)
    out3 = jax.block_until_ready(contranorm(x3, g2, b2, tq=128))
    ref3 = contranorm_ref(x3.astype(jnp.float32), g2, b2)
    assert jnp.allclose(out3.astype(jnp.float32), ref3,
                        atol=5e-2, rtol=5e-2), "bf16 tiled mismatch"

    # 4) ViT-style unaligned sequence length: L=197 padded to 256, keys masked
    B4, L4, D4 = 2, 197, 64
    x4 = jax.random.normal(k2, (B4, L4, D4), dtype=jnp.float32)
    g4 = jnp.ones((D4,), dtype=jnp.float32)
    b4 = jnp.zeros((D4,), dtype=jnp.float32)
    ref4 = contranorm_ref(x4, g4, b4)
    out4 = jax.block_until_ready(contranorm(x4, g4, b4, tq=128,
                                            mxu_dtype=jnp.float32))
    assert out4.shape == (B4, L4, D4)
    assert jnp.allclose(out4, ref4, atol=2e-3, rtol=2e-3), "padded-L mismatch"

    print("KERNEL_OK")
</pallas_src>

<mosaic_0001>
module attributes {stable_mosaic.version = 11 : i64} {
  func.func @kernel(%arg0: i32, %arg1: i32, %arg2: memref<1x8x32xf32, #tpu.memory_space<vmem>>, %arg3: memref<1x32xf32, #tpu.memory_space<vmem>>, %arg4: memref<1x32xf32, #tpu.memory_space<vmem>>, %arg5: memref<1x8x32xf32, #tpu.memory_space<vmem>>, %arg6: memref<8x32xf32, #tpu.memory_space<vmem>>) attributes {dimension_semantics = [#tpu.dimension_semantics<parallel>, #tpu.dimension_semantics<arbitrary>], iteration_bounds = array<i64: 2, 1>, scalar_prefetch = 0 : i64, scratch_operands = 1 : i64, tpu.core_type = #tpu.core_type<tc>, window_params = [{transform_indices = @transform_0, window_bounds = array<i64: 1, 8, 32>}, {pipeline_mode = #tpu.pipeline_mode<synchronous>, transform_indices = @transform_1, window_bounds = array<i64: 1, 32>}, {pipeline_mode = #tpu.pipeline_mode<synchronous>, transform_indices = @transform_2, window_bounds = array<i64: 1, 32>}, {transform_indices = @transform_3, window_bounds = array<i64: 1, 8, 32>}]} {
    %c8_i32 = arith.constant 8 : i32
    %0 = arith.muli %arg1, %c8_i32 : i32
    %1 = tpu.assume_multiple %0, 8 : i32
    %c0_i32 = arith.constant 0 : i32
    %2 = arith.cmpi eq, %arg1, %c0_i32 : i32
    %3 = arith.extui %2 : i1 to i32
    %c0_i32_0 = arith.constant 0 : i32
    %4 = arith.cmpi ne, %3, %c0_i32_0 : i32
    scf.if %4 {
      %c0_23 = arith.constant 0 : index
      %c0_24 = arith.constant 0 : index
      %c0_25 = arith.constant 0 : index
      %49 = vector.load %arg2[%c0_23, %c0_24, %c0_25] : memref<1x8x32xf32, #tpu.memory_space<vmem>>, vector<1x8x32xf32>
      %50 = vector.shape_cast %49 : vector<1x8x32xf32> to vector<8x32xf32>
      %51 = arith.mulf %50, %50 : vector<8x32xf32>
      %cst_26 = arith.constant dense<0.000000e+00> : vector<8xf32>
      %52 = vector.multi_reduction <add>, %51, %cst_26 [1] : vector<8x32xf32> to vector<8xf32>
      %53 = vector.shape_cast %52 : vector<8xf32> to vector<8x1xf32>
      %cst_27 = arith.constant 1.000000e-24 : f32
      %54 = vector.broadcast %cst_27 : f32 to vector<8x1xf32>
      %55 = arith.maximumf %53, %54 : vector<8x1xf32>
      %56 = math.rsqrt %55 : vector<8x1xf32>
      %57 = vector.broadcast %56 : vector<8x1xf32> to vector<8x32xf32>
      %58 = arith.mulf %50, %57 : vector<8x32xf32>
      %c0_28 = arith.constant 0 : index
      %c0_29 = arith.constant 0 : index
      %59 = vector.load %arg6[%c0_28, %c0_29] : memref<8x32xf32, #tpu.memory_space<vmem>>, vector<8x32xf32>
      tpu.vector_store %arg6[%c0_28, %c0_29], %58 {strides = array<i32>} : memref<8x32xf32, #tpu.memory_space<vmem>>, vector<8x32xf32>,
    } else {
    }
    %5 = arith.index_cast %1 : i32 to index
    %c0 = arith.constant 0 : index
    %6 = vector.load %arg6[%5, %c0] : memref<8x32xf32, #tpu.memory_space<vmem>>, vector<8x32xf32>
    %c0_1 = arith.constant 0 : index
    %c0_2 = arith.constant 0 : index
    %7 = vector.load %arg6[%c0_1, %c0_2] : memref<8x32xf32, #tpu.memory_space<vmem>>, vector<8x32xf32>
    %c0_3 = arith.constant 0 : index
    %8 = arith.index_cast %1 : i32 to index
    %c0_4 = arith.constant 0 : index
    %9 = vector.load %arg2[%c0_3, %8, %c0_4] : memref<1x8x32xf32, #tpu.memory_space<vmem>>, vector<1x8x32xf32>
    %10 = vector.shape_cast %9 : vector<1x8x32xf32> to vector<8x32xf32>
    %c0_5 = arith.constant 0 : index
    %c0_6 = arith.constant 0 : index
    %c0_7 = arith.constant 0 : index
    %11 = vector.load %arg2[%c0_5, %c0_6, %c0_7] : memref<1x8x32xf32, #tpu.memory_space<vmem>>, vector<1x8x32xf32>
    %12 = vector.shape_cast %11 : vector<1x8x32xf32> to vector<8x32xf32>
    %cst = arith.constant dense<0.000000e+00> : vector<8x8xf32>
    %13 = tpu.matmul %6, %7, %cst {dimension_numbers = #tpu.dot_dimension_numbers<[1], [1], [0], [0], [0, 0, 1, 0], [], []>} : vector<8x32xf32>, vector<8x32xf32>, vector<8x8xf32> -> vector<8x8xf32>
    %14 = math.exp %13 : vector<8x8xf32>
    %cst_8 = arith.constant dense<0.000000e+00> : vector<8xf32>
    %15 = vector.multi_reduction <add>, %14, %cst_8 [1] : vector<8x8xf32> to vector<8xf32>
    %16 = vector.shape_cast %15 : vector<8xf32> to vector<8x1xf32>
    %cst_9 = arith.constant dense<0.000000e+00> : vector<8x32xf32>
    %17 = tpu.matmul %14, %12, %cst_9 {dimension_numbers = #tpu.dot_dimension_numbers<[1], [0], [0], [1], [0, 0, 1, 1], [], []>} : vector<8x8xf32>, vector<8x32xf32>, vector<8x32xf32> -> vector<8x32xf32>
    %18 = tpu.reciprocal %16 {approx = true} : vector<8x1xf32> -> vector<8x1xf32>
    %cst_10 = arith.constant 1.000000e-01 : f32
    %19 = vector.broadcast %cst_10 : f32 to vector<8x1xf32>
    %20 = arith.mulf %19, %18 : vector<8x1xf32>
    %21 = vector.broadcast %20 : vector<8x1xf32> to vector<8x32xf32>
    %22 = arith.mulf %17, %21 : vector<8x32xf32>
    %23 = arith.subf %10, %22 : vector<8x32xf32>
    %cst_11 = arith.constant dense<0.000000e+00> : vector<8xf32>
    %24 = vector.multi_reduction <add>, %23, %cst_11 [1] : vector<8x32xf32> to vector<8xf32>
    %25 = vector.shape_cast %24 : vector<8xf32> to vector<8x1xf32>
    %cst_12 = arith.constant 3.200000e+01 : f32
    %26 = vector.broadcast %cst_12 : f32 to vector<8x1xf32>
    %27 = arith.divf %25, %26 : vector<8x1xf32>
    %28 = vector.broadcast %27 : vector<8x1xf32> to vector<8x32xf32>
    %29 = arith.subf %23, %28 : vector<8x32xf32>
    %30 = arith.mulf %29, %29 : vector<8x32xf32>
    %cst_13 = arith.constant dense<0.000000e+00> : vector<8xf32>
    %31 = vector.multi_reduction <add>, %30, %cst_13 [1] : vector<8x32xf32> to vector<8xf32>
    %32 = vector.shape_cast %31 : vector<8xf32> to vector<8x1xf32>
    %cst_14 = arith.constant 3.200000e+01 : f32
    %33 = vector.broadcast %cst_14 : f32 to vector<8x1xf32>
    %34 = arith.divf %32, %33 : vector<8x1xf32>
    %cst_15 = arith.constant 9.99999997E-7 : f32
    %35 = vector.broadcast %cst_15 : f32 to vector<8x1xf32>
    %36 = arith.addf %34, %35 : vector<8x1xf32>
    %37 = math.rsqrt %36 : vector<8x1xf32>
    %38 = vector.broadcast %37 : vector<8x1xf32> to vector<8x32xf32>
    %39 = arith.mulf %29, %38 : vector<8x32xf32>
    %c0_16 = arith.constant 0 : index
    %c0_17 = arith.constant 0 : index
    %40 = vector.load %arg3[%c0_16, %c0_17] : memref<1x32xf32, #tpu.memory_space<vmem>>, vector<1x32xf32>
    %41 = vector.broadcast %40 : vector<1x32xf32> to vector<8x32xf32>
    %42 = arith.mulf %39, %41 : vector<8x32xf32>
    %c0_18 = arith.constant 0 : index
    %c0_19 = arith.constant 0 : index
    %43 = vector.load %arg4[%c0_18, %c0_19] : memref<1x32xf32, #tpu.memory_space<vmem>>, vector<1x32xf32>
    %44 = vector.broadcast %43 : vector<1x32xf32> to vector<8x32xf32>
    %45 = arith.addf %42, %44 : vector<8x32xf32>
    %c0_20 = arith.constant 0 : index
    %c0_21 = arith.constant 0 : index
    %c0_22 = arith.constant 0 : index
    %46 = vector.load %arg5[%c0_20, %c0_21, %c0_22] : memref<1x8x32xf32, #tpu.memory_space<vmem>>, vector<1x8x32xf32>
    %47 = vector.shape_cast %46 : vector<1x8x32xf32> to vector<8x32xf32>
    %48 = vector.shape_cast %45 : vector<8x32xf32> to vector<1x8x32xf32>
    tpu.vector_store %arg5[%c0_20, %c0_21, %c0_22], %48 {strides = array<i32>} : memref<1x8x32xf32, #tpu.memory_space<vmem>>, vector<1x8x32xf32>,
    return
  }
  func.func @transform_0(%arg0: i32, %arg1: i32) -> (i32, i32, i32) {
    %c0_i32 = arith.constant 0 : i32
    %c0_i32_0 = arith.constant 0 : i32
    %c0_i32_1 = arith.constant 0 : i32
    return %arg0, %c0_i32, %c0_i32_0 : i32, i32, i32
  }
  func.func @transform_1(%arg0: i32, %arg1: i32) -> (i32, i32) {
    %c0_i32 = arith.constant 0 : i32
    %c0_i32_0 = arith.constant 0 : i32
    %c0_i32_1 = arith.constant 0 : i32
    return %c0_i32, %c0_i32_0 : i32, i32
  }
  func.func @transform_2(%arg0: i32, %arg1: i32) -> (i32, i32) {
    %c0_i32 = arith.constant 0 : i32
    %c0_i32_0 = arith.constant 0 : i32
    %c0_i32_1 = arith.constant 0 : i32
    return %c0_i32, %c0_i32_0 : i32, i32
  }
  func.func @transform_3(%arg0: i32, %arg1: i32) -> (i32, i32, i32) {
    %c0_i32 = arith.constant 0 : i32
    %c0_i32_0 = arith.constant 0 : i32
    return %arg0, %arg1, %c0_i32 : i32, i32, i32
  }
}

</mosaic_0001>

<bundles_post_ra>
// kernel: contranorm.1
= control target key start
LH: loop header
LB: loop body
LE: loop exit
PB: predicated region body
PF: predicated region fallthrough
CT: control target
= control target key end

     0   :  { %8 = vsyncpa [#allocation4], 0  ;;  %s795_s0 = inlined_call_operand.hbm [shape: f32[2,8,32], index: 0, kind: input, shape index: {}]   ;;  %s796_s1 = inlined_call_operand.vmem [shape: f32[1,32], index: 1, kind: input, shape index: {}]   ;;  %s797_s2 = inlined_call_operand.vmem [shape: f32[1,32], index: 2, kind: input, shape index: {}]   ;;  %s798_s3 = inlined_call_operand.hbm [shape: f32[2,8,32], index: 3, kind: output, shape index: {}]  }
   0x1   :  { %10 = vsyncpa [#allocation4 + $0x1], 0 }
   0x2   :  { %11 = vsyncpa [#allocation5], 0 }
   0x3   :  { %13 = vsyncpa [#allocation5 + $0x1], 0  ;;  %s658_s12 = smov 0   ;;  %s660_s13 = smov 0  }
   0x4   :  { %s662_s14 = smov 0   ;;  %s664_s15 = smov 0  }
   0x5   :  { %s666_s16 = smov 0   ;;  %s668_s17 = smov 0  }
   0x6 LB: > { %s432_s18 = sadd.s32 4294967295, %s635_s17   ;;  %s433_s19 = sadd.s32 4294967294, %s635_s17   ;;  %s635_s17 = sphi %s668_s17, %s19_s17   ;;  %s631_s16 = sphi %s666_s16, %s807_s16   ;;  %s627_s15 = sphi %s664_s15, %s806_s15   ;;  %s623_s14 = sphi %s662_s14, %s805_s14   ;;  %s619_s13 = sphi %s660_s13, %s804_s13   ;;  %s615_s12 = sphi %s658_s12, %s803_s12  }
   0x7   : > { %s31_s20 = sadd.s32 1, %s631_s16  ;;  %s38_s21 = sadd.s32 1, %s623_s14 }
   0x8   : > { %p33_p0 = scmp.ge.s32.totalorder %s31_s20, 2  ;;  %p45_p1 = scmp.ne.s32.totalorder %s623_s14, %s619_s13 }
   0x9   : > { %p46_p2 = scmp.eq.s32.totalorder %s635_s17, 0  ;;  %p51_p3 = scmp.ne.s32.totalorder %s619_s13, %s615_s12 }
   0xa   : > { %s809_s20 = smov (%p33_p0, %s31_s20), 0  ;;  %p52_p5 = scmp.eq.s32.totalorder %s432_s18, 0 }
   0xb   : > { %p699_p4 = por %p46_p2, %p45_p1  ;;  %s35_s23 = ssub.s32 %s631_s16, %s809_s20 }
   0xc   : > { %p119_p6 = scmp.eq.s32.totalorder %s432_s18, 1  ;;  %p36_p7 = scmp.eq.s32.totalorder %s35_s23, 0 }
   0xd   : > { %p705_p8 = por %p52_p5, %p51_p3  ;;  %p125_p10 = scmp.eq.s32.totalorder %s433_s19, 1 }
   0xe   : > { %p709_p9 = por %p119_p6, %p45_p1  ;;  %p435_p12 = scmp.ge.s32.totalorder %s635_s17, 2 }
   0xf   : > { %s714_s26 = scalar_select %p36_p7, %s623_s14, %s38_s21  }
  0x10   : > { %p716_p11 = por %p125_p10, %p51_p3  ;;  %p460_p13 = scmp.lt.s32.totalorder %s635_s17, 2 }
  0x11   : > { %s151_s28 = sand.u32 1, %s623_s14   ;;  %s437_s30 = sshll.u32 %s631_s16, 3 }
  0x12   : > { %s436_s29 = sshll.u32 %s151_s28, 3  ;;  %s159_s6 = scalar_lea.hbm %s795_s0, %s437_s30 }
  0x13   : > { %s155_s7 = scalar_lea.vmem [#allocation3], %s436_s29  ;;  %s161_s9 = sshll.u32 %s159_s6, 4  ;;  %s162_s9 = int_to_ptr.hbm [resolvable:$true] %s161_s9 }
  0x14   : > { %s163_s8 = sshll.u32 %s155_s7, 4  ;;  %p453_p0 = pnand %p460_p13, %p699_p4  ;;  %s164_s8 = int_to_ptr.vmem [resolvable:$true] %s163_s8 }
  0x15   : > { %p438_p1 = scmp.ge.s32.totalorder %s635_s17, 1  ;;  %p168_p2 = scmp.lt.s32.totalorder %s635_s17, 3 }
  0x16   : > { %s152_s10 = scalar_lea.sflag [#allocation4], %s151_s28 }
  0x17   : > { %455 = dma.hbm_to_vmem [thread:$0]  (!%p453_p0), %s162_s9, 128, %s164_s8, %s152_s10  }
  0x18   : > { %p169_p3 = pnand %p438_p1, %p168_p2 }
  0x19   : > { %s732_s11 = sand.u32 (!%p169_p3), 1, %s619_s13  }
  0x1a   : > { %172 = sbr.rel (%p169_p3) target bundleno = 721 (0x2d1), region = 32  ;;  %s439_s18 = sshll.u32 (!%p169_p3), %s732_s11, 3 }
  0x1b   : > { %s175_s19 = scalar_lea.sflag (!%p169_p3), [#allocation4], %s732_s11  ;;  %s178_s21 = scalar_lea.vmem (!%p169_p3), [#allocation3], %s439_s18 }
  0x1f   : > { %606 = dma.done.wait (%p705_p8), %s175_s19, 128  }
  0x20   : > { %608 = vsyncadd (%p705_p8), %s175_s19, 4294967168  ;;  %v207_v0 = vld [vmem:[%s178_s21] sm:$0xff]  ;;  %vm209_vm0 = vcmask 261120   ;;  %vm261_vm4 = vcmask 64512   ;;  %v637_v25 = vmov 32.0   ;;  %s445_s22 = sshll.u32 %s627_s15, 3 }
  0x21   : > { %v208_v1 = vmul.f32 %v207_v0, %v207_v0  ;;  %283 = vmatpush.msra.mxu1 %v207_v0  ;;  %v511_v46 = vld [vmem:[%s796_s1] ss:$0 sm:$0xff]  ;;  %s344_s30 = scalar_lea.hbm %s798_s3, %s445_s22  ;;  %s201_s15 = scalar_lea.vmem [#allocation6], %s439_s18 }
  0x22   : > { %v512_v49 = vld [vmem:[%s797_s2] ss:$0 sm:$0xff]  ;;  %s346_s6 = sshll.u32 %s201_s15, 4  ;;  %s348_s7 = sshll.u32 %s344_s30, 4  ;;  %s347_s6 = int_to_ptr.vmem [resolvable:$true] %s346_s6  ;;  %s349_s7 = int_to_ptr.hbm [resolvable:$true] %s348_s7 }
  0x23   : > { %v210_v2 = vsel %vm209_vm0, %v208_v1, 0.0  ;;  %s333_s8 = scalar_lea.sflag [#allocation5], %s732_s11  ;;  %s567_s9 = sshra.s32 %s349_s7, 4  ;;  %s568_s9 = int_to_ptr.hbm [resolvable:$true] %s567_s9 }
  0x24   : > { %211 = vadd.xlane.f32.xlu0 %v210_v2  ;;  %s569_s10 = scalar_lea.hbm %s568_s9, 8  ;;  %s573_s18 = scalar_lea.hbm %s798_s3, 16 }
  0x25   : > { %p570_p4 = scmp.ne.s32.totalorder %s568_s9, %s569_s10  ;;  %p574_p7 = scmp.lt.s32.totalorder %s568_s9, %s798_s3 }
  0x26   : > { %p575_p8 = scmp.lt.s32.totalorder %s573_s18, %s569_s10 }
  0x27   : > { %p571_p5 = pnand %p570_p4, %p709_p9 }
  0x28   : > { %p576_p10 = por %p575_p8, %p574_p7 }
  0x29   : > { %p572_p6 = pneg %p571_p5 }
  0x2b   : > { %p577_p13 = pnand %p576_p10, %p572_p6 }
  0x97   : > { %v212_v3 = vpop.xlane.xlu0 %211 }
  0x98   : > { %v213_v4 = vmax.f32 %v212_v3, 1e-24 }
  0x9a   : > { %513 = vrsqrt.f32 %v213_v4  ;;  %vm220_vm2 = vweird.f32 %v213_v4 }
  0xa0   : > { %v514_v5 = vpop.eup %513 }
  0xa1   : > { %v215_v6 = vmul.f32 %v514_v5, %v213_v4  ;;  %vm221_vm1 = vweird.f32 %v514_v5 }
  0xa2   : > { %vm222_vm3 = vmor %vm220_vm2, %vm221_vm1 }
  0xa3   : > { %v216_v7 = vmul.f32 %v514_v5, %v215_v6 }
  0xa5   : > { %v217_v8 = vmul.f32 0.5, %v216_v7 }
  0xa7   : > { %v218_v9 = vsub.f32 1.5, %v217_v8 }
  0xa9   : > { %v219_v10 = vmul.f32 %v514_v5, %v218_v9 }
  0xab   : > { %v223_v11 = vsel %vm222_vm3, %v514_v5, %v219_v10 }
  0xac   : > { %v224_v12 = vmul.f32 %v223_v11, %v207_v0 }
  0xae   : > { %225 = vst.msk [vmem:[#allocation2] sm:$0xff] %vm209_vm0, %v224_v12 }
  0xb5   : > { %v228_v13 = vld [vmem:[#allocation2] sm:$0xff] }
  0xb6   : > { %441 = vmatpush.xpose.msk.msra.mxu0 %vm209_vm0, %v228_v13 }
  0xb9   : > { %442 = vmatmul.msk.f32.vlgmr.msra.gmra.mxu0 %vm209_vm0, %v228_v13 }
 0x136   : > { %v256_v14 = vpop.f32.mrf.mxu0 }
 0x137   : > { %v259_v15 = vmul.f32 1.442695, %v256_v14 }
 0x139   : > { %515 = vpow2.f32 %v259_v15 }
 0x13f   : > { %v516_v16 = vpop.eup %515 }
 0x140   : > { %443 = vmatmul.msk.f32.vlgmr.msra.gmra.mxu1 %vm261_vm4, %v516_v16  ;;  %v262_v17 = vsel %vm261_vm4, %v516_v16, 0.0 }
 0x141   : > { %263 = vadd.xlane.f32.xlu0 %v262_v17 }
 0x1b4   : > { %v264_v18 = vpop.xlane.xlu0 %263 }
 0x1b5   : > { %517 = vrcp.f32 %v264_v18 }
 0x1b6   : > { %519 = vrcp.f32 %v637_v25 }
 0x1bb   : > { %v518_v19 = vpop.eup %517 }
 0x1bc   : > { %v289_v20 = vmul.f32 0.1, %v518_v19  ;;  %v520_v26 = vpop.eup %519 }
 0x1bd   : > { %v285_v21 = vpop.f32.mrf.mxu1  ;;  %v296_v27 = vmul.f32 32.0, %v520_v26  ;;  %vm300_vm5 = vweird.f32 %v520_v26 }
 0x1be   : > { %v290_v22 = vmul.f32 %v289_v20, %v285_v21 }
 0x1bf   : > { %v297_v28 = vsub.f32 1.0, %v296_v27 }
 0x1c0   : > { %v291_v23 = vsub.f32 %v207_v0, %v290_v22 }
 0x1c1   : > { %v298_v29 = vmul.f32 %v520_v26, %v297_v28 }
 0x1c2   : > { %v292_v24 = vsel %vm209_vm0, %v291_v23, 0.0 }
 0x1c3   : > { %293 = vadd.xlane.f32.xlu1 %v292_v24  ;;  %v299_v30 = vadd.f32 %v520_v26, %v298_v29 }
 0x1c5   : > { %v301_v31 = vsel %vm300_vm5, %v520_v26, %v299_v30 }
 0x236   : > { %v294_v32 = vpop.xlane.xlu1 %293 }
 0x237   : > { %v302_v33 = vmul.f32 %v301_v31, %v294_v32 }
 0x239   : > { %v303_v34 = vsub.f32 %v291_v23, %v302_v33 }
 0x23b   : > { %v304_v35 = vmul.f32 %v303_v34, %v303_v34 }
 0x23d   : > { %v305_v36 = vsel %vm209_vm0, %v304_v35, 0.0 }
 0x23e   : > { %306 = vadd.xlane.f32.xlu1 %v305_v36 }
 0x2b1   : > { %v307_v37 = vpop.xlane.xlu1 %306 }
 0x2b2   : > { %v308_v38 = vmul.f32 %v307_v37, %v301_v31 }
 0x2b4   : > { %v309_v39 = vadd.f32 1e-06, %v308_v38 }
 0x2b6   : > { %521 = vrsqrt.f32 %v309_v39  ;;  %vm316_vm7 = vweird.f32 %v309_v39 }
 0x2bc   : > { %v522_v40 = vpop.eup %521 }
 0x2bd   : > { %v311_v41 = vmul.f32 %v522_v40, %v309_v39  ;;  %vm317_vm6 = vweird.f32 %v522_v40 }
 0x2be   : > { %vm318_vm8 = vmor %vm316_vm7, %vm317_vm6 }
 0x2bf   : > { %v312_v42 = vmul.f32 %v522_v40, %v311_v41 }
 0x2c1   : > { %v313_v43 = vmul.f32 0.5, %v312_v42 }
 0x2c3   : > { %v314_v44 = vsub.f32 1.5, %v313_v43 }
 0x2c5   : > { %v315_v45 = vmul.f32 %v522_v40, %v314_v44 }
 0x2c7   : > { %v319_v47 = vsel %vm318_vm8, %v522_v40, %v315_v45 }
 0x2c8   : > { %v320_v48 = vmul.f32 %v319_v47, %v303_v34 }
 0x2ca   : > { %v325_v50 = vmul.f32 %v511_v46, %v320_v48 }
 0x2cc   : > { %v330_v51 = vadd.f32 %v512_v49, %v325_v50 }
 0x2ce   : > { %331 = vst.msk [vmem:[%s201_s15] sm:$0xff] %vm209_vm0, %v330_v51 }
 0x2cf   : > { %580 = shalt.err (!%p577_p13)
}
 0x2d0   : > { %450 = dma.vmem_to_hbm [thread:$0]  (%p709_p9), %s347_s6, 128, %s349_s7, %s333_s8  }
 0x2d1 PF: > { %s360_s11 = sand.u32 1, %s615_s12   ;;  %p457_p0 = pnand %p435_p12, %p716_p11 }
 0x2d2   : > { %s361_s24 = scalar_lea.sflag [#allocation5], %s360_s11 }
 0x2d3   : > { %p458_p1 = pneg %p457_p0 }
 0x2d5   : > { %610 = dma.done.wait (%p458_p1), %s361_s24, 128  }
 0x2d6   : > { %612 = vsyncadd (%p458_p1), %s361_s24, 4294967168  ;;  %s19_s17 = sadd.s32 1, %s635_s17   ;;  %s803_s12 = smov %s619_s13 }
 0x2d7   : > { %p16_p2 = scmp.ge.s32.totalorder %s19_s17, 4   ;;  %s804_s13 = smov %s623_s14 }
 0x2d8   : > { %s805_s14 = smov %s714_s26  ;;  %s806_s15 = smov %s631_s16 }
 0x2d9   : > { %s807_s16 = smov %s809_s20  ;;  %18 = sbr.rel (!%p16_p2) target bundleno = 6 (0x6), region = 83 }
 0x2de   :  { %367 = vsyncpa [#allocation4], 1 }
 0x2df   :  { %369 = vsyncpa [#allocation4 + $0x1], 1 }
 0x2e0   :  { %370 = vsyncpa [#allocation5], 1 }
 0x2e1   :  { %372 = vsyncpa [#allocation5 + $0x1], 1 }

</bundles_post_ra>
